<compile_context>
chip_gen: v6e
topology: v6e:2x2x1
jax: 0.10.0
libtpu: 0.0.40
codegen_flags: <defaults>
</compile_context>

<pallas_src>
import jax
import jax.numpy as jnp
from jax.experimental import pallas as pl
from jax.experimental.pallas import tpu as pltpu


def _fused_kernel(x_ref, noise_ref, wenc_ref, benc_ref, wkbd_ref, bker_ref,
                  out_ref):
    """Single-step fused forward.

    x_ref     : (B, D)        VMEM  flattened input
    noise_ref : (B, D)        VMEM  flattened noise (added in-kernel)
    wenc_ref  : (D, NK*HID)   VMEM  all encoder weights packed column-wise
    benc_ref  : (1, NK*HID)   VMEM  all encoder biases
    wkbd_ref  : (NK*HID, NK)  VMEM  block-diagonal kernel-net weights
    bker_ref  : (1, NK)       VMEM  kernel-net biases
    out_ref   : (B, 1)        int32 argmax labels
    """
    xn = x_ref[...] + noise_ref[...]                                 # (B, D)

    # All NK encoders in one MXU matmul: h[:, i*HID:(i+1)*HID] = encoder_i(xn)
    h = jnp.dot(xn, wenc_ref[...], preferred_element_type=jnp.float32)
    h = jnp.maximum(h + benc_ref[...], 0.0)                          # (B, NK*HID)

    # All NK kernel-nets in one MXU matmul via the block-diagonal weights.
    scores = jnp.dot(h, wkbd_ref[...],
                     preferred_element_type=jnp.float32) + bker_ref[...]  # (B, NK)

    # First-max-index argmax over the NK lanes.
    nk = scores.shape[-1]
    idx = jax.lax.broadcasted_iota(jnp.int32, scores.shape, 1)
    max_s = jnp.max(scores, axis=-1, keepdims=True)
    cand = jnp.where(scores == max_s, idx, nk)
    out_ref[...] = jnp.min(cand, axis=-1, keepdims=True).astype(jnp.int32)


@jax.jit
def adaptive_clustering_classifier(x, noise, w_enc, b_enc, w_ker, b_ker):
    """x, noise: (B, C, H, W) NCHW.  Returns (B,) int32 cluster labels.

    w_enc: (NK, D, HID)  encoder Linear weights
    b_enc: (NK, HID)     encoder Linear biases
    w_ker: (NK, HID)     kernel-net Linear(HID->1) weights
    b_ker: (NK,)         kernel-net Linear biases
    """
    B = x.shape[0]
    NK, D, HID = w_enc.shape

    # Wrapper-level parameter packing (tiny, done once per call under jit).
    x_flat = x.reshape(B, D).astype(jnp.float32)
    noise_flat = noise.reshape(B, D).astype(jnp.float32)

    # (NK, D, HID) -> (D, NK*HID): column i*HID+h holds encoder_i weight col h.
    w_enc_flat = jnp.transpose(w_enc, (1, 0, 2)).reshape(D, NK * HID)
    b_enc_flat = b_enc.reshape(1, NK * HID)

    # Block-diagonal (NK*HID, NK): rows i*HID:(i+1)*HID of column i = w_ker[i].
    eye = jnp.eye(NK, dtype=w_ker.dtype)
    w_ker_bd = (w_ker[:, :, None] * eye[:, None, :]).reshape(NK * HID, NK)
    b_ker_row = b_ker.reshape(1, NK)

    out = pl.pallas_call(
        _fused_kernel,
        out_shape=jax.ShapeDtypeStruct((B, 1), jnp.int32),
        in_specs=[
            pl.BlockSpec(memory_space=pltpu.MemorySpace.VMEM),  # x_flat
            pl.BlockSpec(memory_space=pltpu.MemorySpace.VMEM),  # noise_flat
            pl.BlockSpec(memory_space=pltpu.MemorySpace.VMEM),  # w_enc_flat
            pl.BlockSpec(memory_space=pltpu.MemorySpace.VMEM),  # b_enc_flat
            pl.BlockSpec(memory_space=pltpu.MemorySpace.VMEM),  # w_ker_bd
            pl.BlockSpec(memory_space=pltpu.MemorySpace.VMEM),  # b_ker_row
        ],
        out_specs=pl.BlockSpec(memory_space=pltpu.MemorySpace.VMEM),
    )(x_flat, noise_flat, w_enc_flat, b_enc_flat, w_ker_bd, b_ker_row)
    return out[:, 0]


def _reference(x, noise, w_enc, b_enc, w_ker, b_ker):
    """Pure-JAX reference of the torch forward (for a sanity check)."""
    B = x.shape[0]
    xf = (x + noise).reshape(B, -1).astype(jnp.float32)
    h = jnp.maximum(jnp.einsum("bd,kdh->kbh", xf, w_enc) + b_enc[:, None, :], 0.0)
    scores = jnp.einsum("kbh,kh->bk", h, w_ker) + b_ker[None, :]
    return jnp.argmax(scores, axis=1).astype(jnp.int32)


if __name__ == "__main__":
    # Small shapes consistent with the module's forward.
    B, C, H, W = 2, 4, 16, 16
    D = C * H * W          # 1024
    HID = 32
    NK = 5                 # number of (encoder, kernel_net) pairs

    key = jax.random.PRNGKey(0)
    kx, kn, k1, k2, k3, k4 = jax.random.split(key, 6)

    x = jax.random.normal(kx, (B, C, H, W), dtype=jnp.float32)
    noise = 0.05 * jax.random.normal(kn, (B, C, H, W), dtype=jnp.float32)

    # Deterministic synthetic parameters (one set per kernel/encoder pair).
    w_enc = 0.02 * jax.random.normal(k1, (NK, D, HID), dtype=jnp.float32)
    b_enc = 0.01 * jax.random.normal(k2, (NK, HID), dtype=jnp.float32)
    w_ker = 0.10 * jax.random.normal(k3, (NK, HID), dtype=jnp.float32)
    b_ker = 0.01 * jax.random.normal(k4, (NK,), dtype=jnp.float32)

    labels = adaptive_clustering_classifier(x, noise, w_enc, b_enc, w_ker, b_ker)
    labels = jax.block_until_ready(labels)

    ref = _reference(x, noise, w_enc, b_enc, w_ker, b_ker)
    assert labels.shape == (B,)
    assert bool(jnp.all(labels == ref)), (labels, ref)

    print("KERNEL_OK")
</pallas_src>

<mosaic_0001>
module attributes {stable_mosaic.version = 11 : i64} {
  func.func @_fused_kernel(%arg0: memref<2x1024xf32, #tpu.memory_space<vmem>>, %arg1: memref<2x1024xf32, #tpu.memory_space<vmem>>, %arg2: memref<1024x160xf32, #tpu.memory_space<vmem>>, %arg3: memref<1x160xf32, #tpu.memory_space<vmem>>, %arg4: memref<160x5xf32, #tpu.memory_space<vmem>>, %arg5: memref<1x5xf32, #tpu.memory_space<vmem>>, %arg6: memref<2x1xi32, #tpu.memory_space<vmem>>) attributes {dimension_semantics = [], scalar_prefetch = 0 : i64, scratch_operands = 0 : i64, tpu.core_type = #tpu.core_type<tc>} {
    %c0 = arith.constant 0 : index
    %c0_0 = arith.constant 0 : index
    %0 = vector.load %arg0[%c0, %c0_0] : memref<2x1024xf32, #tpu.memory_space<vmem>>, vector<2x1024xf32>
    %c0_1 = arith.constant 0 : index
    %c0_2 = arith.constant 0 : index
    %1 = vector.load %arg1[%c0_1, %c0_2] : memref<2x1024xf32, #tpu.memory_space<vmem>>, vector<2x1024xf32>
    %2 = arith.addf %0, %1 : vector<2x1024xf32>
    %c0_3 = arith.constant 0 : index
    %c0_4 = arith.constant 0 : index
    %3 = vector.load %arg2[%c0_3, %c0_4] : memref<1024x160xf32, #tpu.memory_space<vmem>>, vector<1024x160xf32>
    %cst = arith.constant dense<0.000000e+00> : vector<2x160xf32>
    %4 = tpu.matmul %2, %3, %cst {dimension_numbers = #tpu.dot_dimension_numbers<[1], [0], [0], [1], [0, 0, 1, 1], [], []>} : vector<2x1024xf32>, vector<1024x160xf32>, vector<2x160xf32> -> vector<2x160xf32>
    %c0_5 = arith.constant 0 : index
    %c0_6 = arith.constant 0 : index
    %5 = vector.load %arg3[%c0_5, %c0_6] : memref<1x160xf32, #tpu.memory_space<vmem>>, vector<1x160xf32>
    %6 = vector.broadcast %5 : vector<1x160xf32> to vector<2x160xf32>
    %7 = arith.addf %4, %6 : vector<2x160xf32>
    %cst_7 = arith.constant 0.000000e+00 : f32
    %8 = vector.broadcast %cst_7 : f32 to vector<2x160xf32>
    %9 = arith.maximumf %7, %8 : vector<2x160xf32>
    %c0_8 = arith.constant 0 : index
    %c0_9 = arith.constant 0 : index
    %10 = vector.load %arg4[%c0_8, %c0_9] : memref<160x5xf32, #tpu.memory_space<vmem>>, vector<160x5xf32>
    %cst_10 = arith.constant dense<0.000000e+00> : vector<2x5xf32>
    %11 = tpu.matmul %9, %10, %cst_10 {dimension_numbers = #tpu.dot_dimension_numbers<[1], [0], [0], [1], [0, 0, 1, 1], [], []>} : vector<2x160xf32>, vector<160x5xf32>, vector<2x5xf32> -> vector<2x5xf32>
    %c0_11 = arith.constant 0 : index
    %c0_12 = arith.constant 0 : index
    %12 = vector.load %arg5[%c0_11, %c0_12] : memref<1x5xf32, #tpu.memory_space<vmem>>, vector<1x5xf32>
    %13 = vector.broadcast %12 : vector<1x5xf32> to vector<2x5xf32>
    %14 = arith.addf %11, %13 : vector<2x5xf32>
    %15 = tpu.iota {dimensions = array<i32: 1>} : vector<2x5xi32>
    %cst_13 = arith.constant dense<0xFF800000> : vector<2xf32>
    %16 = vector.multi_reduction <maximumf>, %14, %cst_13 [1] : vector<2x5xf32> to vector<2xf32>
    %17 = vector.shape_cast %16 : vector<2xf32> to vector<2x1xf32>
    %18 = vector.broadcast %17 : vector<2x1xf32> to vector<2x5xf32>
    %19 = arith.cmpf oeq, %14, %18 : vector<2x5xf32>
    %c5_i32 = arith.constant 5 : i32
    %20 = vector.broadcast %c5_i32 : i32 to vector<2x5xi32>
    %21 = arith.select %19, %15, %20 : vector<2x5xi1>, vector<2x5xi32>
    %cst_14 = arith.constant dense<2147483647> : vector<2xi32>
    %22 = vector.multi_reduction <minsi>, %21, %cst_14 [1] : vector<2x5xi32> to vector<2xi32>
    %23 = vector.shape_cast %22 : vector<2xi32> to vector<2x1xi32>
    %c0_15 = arith.constant 0 : index
    %c0_16 = arith.constant 0 : index
    %24 = vector.load %arg6[%c0_15, %c0_16] : memref<2x1xi32, #tpu.memory_space<vmem>>, vector<2x1xi32>
    tpu.vector_store %arg6[%c0_15, %c0_16], %23 {strides = array<i32>} : memref<2x1xi32, #tpu.memory_space<vmem>>, vector<2x1xi32>,
    return
  }
}

</mosaic_0001>

<bundles_post_ra>
// kernel: adaptive_clustering_classifier.1
= control target key start
LH: loop header
LB: loop body
LE: loop exit
PB: predicated region body
PF: predicated region fallthrough
CT: control target
= control target key end

     0   :  { %vm654_vm0 = vcmask 261120   ;;  %vm730_vm1 = vcmask 33792   ;;  %vm751_vm4 = vcmask 1024   ;;  %s1670_s2 = inlined_call_operand.vmem [shape: f32[1024,160], index: 2, kind: input, shape index: {}]   ;;  %s1671_s0 = inlined_call_operand.vmem [shape: f32[2,1024], index: 0, kind: input, shape index: {}]   ;;  %s1672_s1 = inlined_call_operand.vmem [shape: f32[2,1024], index: 1, kind: input, shape index: {}]   ;;  %s1673_s4 = inlined_call_operand.vmem [shape: f32[160,5], index: 4, kind: input, shape index: {}]   ;;  %s1674_s3 = inlined_call_operand.vmem [shape: f32[1,160], index: 3, kind: input, shape index: {}]   ;;  %s1675_s5 = inlined_call_operand.vmem [shape: f32[1,5], index: 5, kind: input, shape index: {}]   ;;  %s1676_s6 = inlined_call_operand.vmem [shape: s32[2,1], index: 6, kind: output, shape index: {}]  }
   0x1   :  { %v60_v0 = vld [vmem:[%s1670_s2 + $0xf8] sm:$0xff]  ;;  %v59_v2 = vld [vmem:[%s1670_s2 + $0xf0] sm:$0xff]  ;;  %v58_v4 = vld [vmem:[%s1670_s2 + $0xe8] sm:$0xff] }
   0x2   :  { %v124_v1 = vld [vmem:[%s1670_s2 + $0x2f8] sm:$0xff]  ;;  %341 = vmatprep.subr.mxu0 %v60_v0  ;;  %v123_v3 = vld [vmem:[%s1670_s2 + $0x2f0] sm:$0xff]  ;;  %v122_v5 = vld [vmem:[%s1670_s2 + $0x2e8] sm:$0xff] }
   0x3   :  { %412 = vmatprep.subr.mxu1 %v124_v1  ;;  %342 = vmatpush1.msra.mxu0 %v59_v2  ;;  %v57_v6 = vld [vmem:[%s1670_s2 + $0xe0] sm:$0xff]  ;;  %v56_v8 = vld [vmem:[%s1670_s2 + $0xd8] sm:$0xff]  ;;  %v55_v10 = vld [vmem:[%s1670_s2 + $0xd0] sm:$0xff] }
   0x4   :  { %413 = vmatpush1.msra.mxu1 %v123_v3  ;;  %v121_v7 = vld [vmem:[%s1670_s2 + $0x2e0] sm:$0xff]  ;;  %343 = vmatprep.subr.mxu0 %v58_v4  ;;  %v120_v9 = vld [vmem:[%s1670_s2 + $0x2d8] sm:$0xff]  ;;  %v119_v11 = vld [vmem:[%s1670_s2 + $0x2d0] sm:$0xff] }
   0x5   :  { %414 = vmatprep.subr.mxu1 %v122_v5  ;;  %344 = vmatpush1.msra.mxu0 %v57_v6  ;;  %v54_v12 = vld [vmem:[%s1670_s2 + $0xc8] sm:$0xff]  ;;  %v53_v14 = vld [vmem:[%s1670_s2 + $0xc0] sm:$0xff]  ;;  %v52_v16 = vld [vmem:[%s1670_s2 + $0xb8] sm:$0xff] }
   0x6   :  { %415 = vmatpush1.msra.mxu1 %v121_v7  ;;  %v118_v13 = vld [vmem:[%s1670_s2 + $0x2c8] sm:$0xff]  ;;  %345 = vmatprep.subr.mxu0 %v56_v8  ;;  %v117_v15 = vld [vmem:[%s1670_s2 + $0x2c0] sm:$0xff]  ;;  %v116_v17 = vld [vmem:[%s1670_s2 + $0x2b8] sm:$0xff] }
   0x7   :  { %416 = vmatprep.subr.mxu1 %v120_v9  ;;  %346 = vmatpush1.msra.mxu0 %v55_v10  ;;  %v51_v18 = vld [vmem:[%s1670_s2 + $0xb0] sm:$0xff]  ;;  %v50_v20 = vld [vmem:[%s1670_s2 + $0xa8] sm:$0xff]  ;;  %v49_v22 = vld [vmem:[%s1670_s2 + $0xa0] sm:$0xff] }
   0x8   :  { %417 = vmatpush1.msra.mxu1 %v119_v11  ;;  %347 = vmatprep.subr.mxu0 %v54_v12  ;;  %v115_v19 = vld [vmem:[%s1670_s2 + $0x2b0] sm:$0xff]  ;;  %v114_v21 = vld [vmem:[%s1670_s2 + $0x2a8] sm:$0xff]  ;;  %v113_v23 = vld [vmem:[%s1670_s2 + $0x2a0] sm:$0xff] }
   0x9   :  { %418 = vmatprep.subr.mxu1 %v118_v13  ;;  %348 = vmatpush1.msra.mxu0 %v53_v14  ;;  %v48_v24 = vld [vmem:[%s1670_s2 + $0x98] sm:$0xff]  ;;  %v47_v26 = vld [vmem:[%s1670_s2 + $0x90] sm:$0xff]  ;;  %v46_v28 = vld [vmem:[%s1670_s2 + $0x88] sm:$0xff]  ;;  %v287_v14 = vlaneseq }
   0xa   :  { %419 = vmatpush1.msra.mxu1 %v117_v15  ;;  %349 = vmatprep.subr.mxu0 %v52_v16  ;;  %v112_v25 = vld [vmem:[%s1670_s2 + $0x298] sm:$0xff]  ;;  %v111_v27 = vld [vmem:[%s1670_s2 + $0x290] sm:$0xff]  ;;  %v110_v29 = vld [vmem:[%s1670_s2 + $0x288] sm:$0xff]  ;;  %v761_v15 = vmov 1983009808  }
   0xb   :  { %420 = vmatprep.subr.mxu1 %v116_v17  ;;  %350 = vmatpush1.msra.mxu0 %v51_v18  ;;  %v45_v30 = vld [vmem:[%s1670_s2 + $0x80] sm:$0xff]  ;;  %v44_v32 = vld [vmem:[%s1670_s2 + $0x78] sm:$0xff]  ;;  %v43_v34 = vld [vmem:[%s1670_s2 + $0x70] sm:$0xff]  ;;  %v301_v16 = vunpack.c.l.s4 %v761_v15 }
   0xc   :  { %421 = vmatpush1.msra.mxu1 %v115_v19  ;;  %351 = vmatprep.subr.mxu0 %v50_v20  ;;  %v109_v31 = vld [vmem:[%s1670_s2 + $0x280] sm:$0xff]  ;;  %v108_v33 = vld [vmem:[%s1670_s2 + $0x278] sm:$0xff]  ;;  %v107_v35 = vld [vmem:[%s1670_s2 + $0x270] sm:$0xff] }
   0xd   :  { %422 = vmatprep.subr.mxu1 %v114_v21  ;;  %352 = vmatpush1.msra.mxu0 %v49_v22  ;;  %v42_v36 = vld [vmem:[%s1670_s2 + $0x68] sm:$0xff]  ;;  %v41_v38 = vld [vmem:[%s1670_s2 + $0x60] sm:$0xff]  ;;  %v40_v40 = vld [vmem:[%s1670_s2 + $0x58] sm:$0xff] }
   0xe   :  { %423 = vmatpush1.msra.mxu1 %v113_v23  ;;  %353 = vmatprep.subr.mxu0 %v48_v24  ;;  %v106_v37 = vld [vmem:[%s1670_s2 + $0x268] sm:$0xff]  ;;  %v105_v39 = vld [vmem:[%s1670_s2 + $0x260] sm:$0xff]  ;;  %v104_v41 = vld [vmem:[%s1670_s2 + $0x258] sm:$0xff] }
   0xf   :  { %424 = vmatprep.subr.mxu1 %v112_v25  ;;  %354 = vmatpush1.msra.mxu0 %v47_v26  ;;  %v39_v42 = vld [vmem:[%s1670_s2 + $0x50] sm:$0xff]  ;;  %v38_v44 = vld [vmem:[%s1670_s2 + $0x48] sm:$0xff]  ;;  %v37_v46 = vld [vmem:[%s1670_s2 + $0x40] sm:$0xff]  ;;  %v1057_v25 = vshrl.u32 %v287_v14, 7  ;;  %v302_v26 = vunpack.c.0.s8 %v301_v16 }
  0x10   :  { %425 = vmatpush1.msra.mxu1 %v111_v27  ;;  %355 = vmatprep.subr.mxu0 %v46_v28  ;;  %v103_v43 = vld [vmem:[%s1670_s2 + $0x250] sm:$0xff]  ;;  %v102_v45 = vld [vmem:[%s1670_s2 + $0x248] sm:$0xff]  ;;  %v101_v47 = vld [vmem:[%s1670_s2 + $0x240] sm:$0xff] }
  0x11   :  { %426 = vmatprep.subr.mxu1 %v110_v29  ;;  %356 = vmatpush1.msra.mxu0 %v45_v30  ;;  %v36_v48 = vld [vmem:[%s1670_s2 + $0x38] sm:$0xff]  ;;  %v35_v50 = vld [vmem:[%s1670_s2 + $0x30] sm:$0xff]  ;;  %v34_v52 = vld [vmem:[%s1670_s2 + $0x28] sm:$0xff] }
  0x12   :  { %427 = vmatpush1.msra.mxu1 %v109_v31  ;;  %357 = vmatprep.subr.mxu0 %v44_v32  ;;  %v100_v49 = vld [vmem:[%s1670_s2 + $0x238] sm:$0xff]  ;;  %v99_v51 = vld [vmem:[%s1670_s2 + $0x230] sm:$0xff]  ;;  %v98_v53 = vld [vmem:[%s1670_s2 + $0x228] sm:$0xff] }
  0x13   :  { %428 = vmatprep.subr.mxu1 %v108_v33  ;;  %358 = vmatpush1.msra.mxu0 %v43_v34  ;;  %v33_v54 = vld [vmem:[%s1670_s2 + $0x20] sm:$0xff]  ;;  %v32_v56 = vld [vmem:[%s1670_s2 + $0x18] sm:$0xff]  ;;  %v31_v58 = vld [vmem:[%s1670_s2 + $0x10] sm:$0xff] }
  0x14   :  { %429 = vmatpush1.msra.mxu1 %v107_v35  ;;  %359 = vmatprep.subr.mxu0 %v42_v36  ;;  %v97_v55 = vld [vmem:[%s1670_s2 + $0x220] sm:$0xff]  ;;  %v96_v57 = vld [vmem:[%s1670_s2 + $0x218] sm:$0xff]  ;;  %v95_v59 = vld [vmem:[%s1670_s2 + $0x210] sm:$0xff] }
  0x15   :  { %430 = vmatprep.subr.mxu1 %v106_v37  ;;  %360 = vmatpush1.msra.mxu0 %v41_v38  ;;  %v30_v60 = vld [vmem:[%s1670_s2 + $0x8] sm:$0xff]  ;;  %v29_v62 = vld [vmem:[%s1670_s2] sm:$0xff]  ;;  %v92_v0 = vld [vmem:[%s1670_s2 + $0x1f8] sm:$0xff]  ;;  %v1090_v37 = vsub.s32 %v302_v26, %v1057_v25 }
  0x16   :  { %431 = vmatpush1.msra.mxu1 %v105_v39  ;;  %361 = vmatprep.subr.mxu0 %v40_v40  ;;  %v94_v61 = vld [vmem:[%s1670_s2 + $0x208] sm:$0xff]  ;;  %v93_v63 = vld [vmem:[%s1670_s2 + $0x200] sm:$0xff]  ;;  %v156_v1 = vld [vmem:[%s1670_s2 + $0x3f8] sm:$0xff] }
  0x17   :  { %432 = vmatprep.subr.mxu1 %v104_v41  ;;  %362 = vmatpush1.msra.mxu0 %v39_v42  ;;  %v91_v2 = vld [vmem:[%s1670_s2 + $0x1f0] sm:$0xff]  ;;  %v90_v4 = vld [vmem:[%s1670_s2 + $0x1e8] sm:$0xff]  ;;  %v89_v6 = vld [vmem:[%s1670_s2 + $0x1e0] sm:$0xff] }
  0x18   :  { %433 = vmatpush1.msra.mxu1 %v103_v43  ;;  %363 = vmatprep.subr.mxu0 %v38_v44  ;;  %v155_v3 = vld [vmem:[%s1670_s2 + $0x3f0] sm:$0xff]  ;;  %v154_v5 = vld [vmem:[%s1670_s2 + $0x3e8] sm:$0xff]  ;;  %v153_v7 = vld [vmem:[%s1670_s2 + $0x3e0] sm:$0xff] }
  0x19   :  { %434 = vmatprep.subr.mxu1 %v102_v45  ;;  %364 = vmatpush1.msra.mxu0 %v37_v46  ;;  %v88_v8 = vld [vmem:[%s1670_s2 + $0x1d8] sm:$0xff]  ;;  %v87_v10 = vld [vmem:[%s1670_s2 + $0x1d0] sm:$0xff]  ;;  %v86_v12 = vld [vmem:[%s1670_s2 + $0x1c8] sm:$0xff] }
  0x1a   :  { %435 = vmatpush1.msra.mxu1 %v101_v47  ;;  %365 = vmatprep.subr.mxu0 %v36_v48  ;;  %v152_v9 = vld [vmem:[%s1670_s2 + $0x3d8] sm:$0xff]  ;;  %v151_v11 = vld [vmem:[%s1670_s2 + $0x3d0] sm:$0xff]  ;;  %v150_v13 = vld [vmem:[%s1670_s2 + $0x3c8] sm:$0xff] }
  0x1b   :  { %436 = vmatprep.subr.mxu1 %v100_v49  ;;  %366 = vmatpush1.msra.mxu0 %v35_v50  ;;  %v85_v17 = vld [vmem:[%s1670_s2 + $0x1c0] sm:$0xff]  ;;  %v84_v19 = vld [vmem:[%s1670_s2 + $0x1b8] sm:$0xff]  ;;  %v83_v21 = vld [vmem:[%s1670_s2 + $0x1b0] sm:$0xff] }
  0x1c   :  { %437 = vmatpush1.msra.mxu1 %v99_v51  ;;  %367 = vmatprep.subr.mxu0 %v34_v52  ;;  %v149_v18 = vld [vmem:[%s1670_s2 + $0x3c0] sm:$0xff]  ;;  %v148_v20 = vld [vmem:[%s1670_s2 + $0x3b8] sm:$0xff]  ;;  %v147_v22 = vld [vmem:[%s1670_s2 + $0x3b0] sm:$0xff] }
  0x1d   :  { %438 = vmatprep.subr.mxu1 %v98_v53  ;;  %368 = vmatpush1.msra.mxu0 %v33_v54  ;;  %v82_v23 = vld [vmem:[%s1670_s2 + $0x1a8] sm:$0xff]  ;;  %v81_v27 = vld [vmem:[%s1670_s2 + $0x1a0] sm:$0xff]  ;;  %v80_v29 = vld [vmem:[%s1670_s2 + $0x198] sm:$0xff] }
  0x1e   :  { %439 = vmatpush1.msra.mxu1 %v97_v55  ;;  %369 = vmatprep.subr.mxu0 %v32_v56  ;;  %v146_v24 = vld [vmem:[%s1670_s2 + $0x3a8] sm:$0xff]  ;;  %v145_v28 = vld [vmem:[%s1670_s2 + $0x3a0] sm:$0xff]  ;;  %v144_v30 = vld [vmem:[%s1670_s2 + $0x398] sm:$0xff] }
  0x1f   :  { %440 = vmatprep.subr.mxu1 %v96_v57  ;;  %370 = vmatpush1.msra.mxu0 %v31_v58  ;;  %v24_v31 = vld [vmem:[%s1671_s0 + $0x8] sm:$0xff]  ;;  %v79_v32 = vld [vmem:[%s1670_s2 + $0x190] sm:$0xff]  ;;  %v77_v39 = vld [vmem:[%s1670_s2 + $0x180] sm:$0xff] }
  0x20   :  { %441 = vmatpush1.msra.mxu1 %v95_v59  ;;  %371 = vmatprep.subr.mxu0 %v30_v60  ;;  %v143_v33 = vld [vmem:[%s1670_s2 + $0x390] sm:$0xff]  ;;  %v26_v34 = vld [vmem:[%s1672_s1 + $0x8] sm:$0xff]  ;;  %v141_v40 = vld [vmem:[%s1670_s2 + $0x380] sm:$0xff] }
  0x21   :  { %442 = vmatprep.subr.mxu1 %v94_v61  ;;  %372 = vmatpush1.msra.mxu0 %v29_v62  ;;  %v78_v35 = vld [vmem:[%s1670_s2 + $0x188] sm:$0xff]  ;;  %v28_v38 = vadd.f32 %v26_v34, %v24_v31  ;;  %v76_v41 = vld [vmem:[%s1670_s2 + $0x178] sm:$0xff]  ;;  %v75_v43 = vld [vmem:[%s1670_s2 + $0x170] sm:$0xff] }
  0x22   :  { %443 = vmatpush1.msra.mxu1 %v93_v63  ;;  %373 = vmatprep.subr.mxu0 %v92_v0  ;;  %v142_v36 = vld [vmem:[%s1670_s2 + $0x388] sm:$0xff]  ;;  %v140_v42 = vld [vmem:[%s1670_s2 + $0x378] sm:$0xff]  ;;  %v139_v45 = vld [vmem:[%s1670_s2 + $0x370] sm:$0xff] }
  0x23   :  { %444 = vmatprep.subr.mxu1 %v156_v1  ;;  %374 = vmatpush2.msra.mxu0 %v91_v2  ;;  %v1108_v44 = vrot.slane %v28_v38, %v1090_v37  ;;  %v23_v46 = vld [vmem:[%s1671_s0] sm:$0xff]  ;;  %v316_v48 = vcombine.high %v28_v38, %v28_v38  ;;  %v74_v49 = vld [vmem:[%s1670_s2 + $0x168] sm:$0xff]  ;;  %v72_v54 = vld [vmem:[%s1670_s2 + $0x158] sm:$0xff] }
  0x24   :  { %445 = vmatpush2.msra.mxu1 %v155_v3  ;;  %375 = vmatprep.subr.mxu0 %v90_v4  ;;  %v25_v47 = vld [vmem:[%s1672_s1] sm:$0xff]  ;;  %v138_v50 = vld [vmem:[%s1670_s2 + $0x368] sm:$0xff]  ;;  %v136_v55 = vld [vmem:[%s1670_s2 + $0x358] sm:$0xff] }
  0x25   :  { %446 = vmatprep.subr.mxu1 %v154_v5  ;;  %376 = vmatpush2.msra.mxu0 %v89_v6  ;;  %v73_v51 = vld [vmem:[%s1670_s2 + $0x160] sm:$0xff]  ;;  %v1132_v53 = vrot.slane %v316_v48, %v1090_v37  ;;  %v27_v56 = vadd.f32 %v25_v47, %v23_v46  ;;  %v71_v57 = vld [vmem:[%s1670_s2 + $0x150] sm:$0xff]  ;;  %v70_v59 = vld [vmem:[%s1670_s2 + $0x148] sm:$0xff] }
  0x26   :  { %447 = vmatpush2.msra.mxu1 %v153_v7  ;;  %377 = vmatprep.subr.mxu0 %v88_v8  ;;  %v137_v52 = vld [vmem:[%s1670_s2 + $0x360] sm:$0xff]  ;;  %v135_v58 = vld [vmem:[%s1670_s2 + $0x350] sm:$0xff]  ;;  %v134_v60 = vld [vmem:[%s1670_s2 + $0x348] sm:$0xff] }
  0x27   :  { %448 = vmatprep.subr.mxu1 %v152_v9  ;;  %378 = vmatpush2.msra.mxu0 %v87_v10  ;;  %v69_v61 = vld [vmem:[%s1670_s2 + $0x140] sm:$0xff]  ;;  %v68_v63 = vld [vmem:[%s1670_s2 + $0x138] sm:$0xff]  ;;  %v299_v1 = vcombine.high %v27_v56, %v27_v56  ;;  %v67_v2 = vld [vmem:[%s1670_s2 + $0x130] sm:$0xff]  ;;  %v306_v6 = vrot.slane %v27_v56, %v1090_v37 }
  0x28   :  { %449 = vmatpush2.msra.mxu1 %v151_v11  ;;  %379 = vmatprep.subr.mxu0 %v86_v12  ;;  %v133_v62 = vld [vmem:[%s1670_s2 + $0x340] sm:$0xff]  ;;  %v132_v0 = vld [vmem:[%s1670_s2 + $0x338] sm:$0xff]  ;;  %v131_v3 = vld [vmem:[%s1670_s2 + $0x330] sm:$0xff] }
  0x29   :  { %450 = vmatprep.subr.mxu1 %v150_v13  ;;  %380 = vmatpush2.msra.mxu0 %v85_v17  ;;  %v66_v4 = vld [vmem:[%s1670_s2 + $0x128] sm:$0xff]  ;;  %v65_v7 = vld [vmem:[%s1670_s2 + $0x120] sm:$0xff]  ;;  %v64_v9 = vld [vmem:[%s1670_s2 + $0x118] sm:$0xff]  ;;  %v313_v11 = vrot.slane %v299_v1, %v1090_v37  ;;  %v314_v17 = vcombine.high %v306_v6, %v306_v6 }
  0x2a   :  { %451 = vmatpush2.msra.mxu1 %v149_v18  ;;  %381 = vmatprep.subr.mxu0 %v84_v19  ;;  %v130_v5 = vld [vmem:[%s1670_s2 + $0x328] sm:$0xff]  ;;  %v129_v8 = vld [vmem:[%s1670_s2 + $0x320] sm:$0xff]  ;;  %v128_v10 = vld [vmem:[%s1670_s2 + $0x318] sm:$0xff] }
  0x2b   :  { %452 = vmatprep.subr.mxu1 %v148_v20  ;;  %382 = vmatpush2.msra.mxu0 %v83_v21  ;;  %v63_v12 = vld [vmem:[%s1670_s2 + $0x110] sm:$0xff]  ;;  %v62_v15 = vld [vmem:[%s1670_s2 + $0x108] sm:$0xff]  ;;  %v61_v18 = vld [vmem:[%s1670_s2 + $0x100] sm:$0xff]  ;;  %v315_v20 = vcombine.high %v313_v11, %v313_v11 }
  0x2c   :  { %453 = vmatpush2.msra.mxu1 %v147_v22  ;;  %383 = vmatprep.subr.mxu0 %v82_v23  ;;  %v127_v13 = vld [vmem:[%s1670_s2 + $0x310] sm:$0xff]  ;;  %v126_v16 = vld [vmem:[%s1670_s2 + $0x308] sm:$0xff]  ;;  %v125_v19 = vld [vmem:[%s1670_s2 + $0x300] sm:$0xff] }
  0x2d   :  { %454 = vmatprep.subr.mxu1 %v146_v24  ;;  %384 = vmatpush2.msra.mxu0 %v81_v27  ;;  %v188_v21 = vld [vmem:[%s1670_s2 + $0x4f8] sm:$0xff]  ;;  %v187_v23 = vld [vmem:[%s1670_s2 + $0x4f0] sm:$0xff]  ;;  %v186_v26 = vld [vmem:[%s1670_s2 + $0x4e8] sm:$0xff] }
  0x2e   :  { %455 = vmatpush2.msra.mxu1 %v145_v28  ;;  %385 = vmatprep.subr.mxu0 %v80_v29  ;;  %v252_v22 = vld [vmem:[%s1670_s2 + $0x6f8] sm:$0xff]  ;;  %v251_v24 = vld [vmem:[%s1670_s2 + $0x6f0] sm:$0xff]  ;;  %v250_v27 = vld [vmem:[%s1670_s2 + $0x6e8] sm:$0xff] }
  0x2f   :  { %456 = vmatprep.subr.mxu1 %v144_v30  ;;  %386 = vmatpush2.msra.mxu0 %v79_v32  ;;  %v185_v28 = vld [vmem:[%s1670_s2 + $0x4e0] sm:$0xff]  ;;  %v184_v30 = vld [vmem:[%s1670_s2 + $0x4d8] sm:$0xff]  ;;  %v183_v32 = vld [vmem:[%s1670_s2 + $0x4d0] sm:$0xff] }
  0x30   :  { %457 = vmatpush2.msra.mxu1 %v143_v33  ;;  %387 = vmatprep.subr.mxu0 %v78_v35  ;;  %v249_v29 = vld [vmem:[%s1670_s2 + $0x6e0] sm:$0xff]  ;;  %v248_v31 = vld [vmem:[%s1670_s2 + $0x6d8] sm:$0xff]  ;;  %v247_v33 = vld [vmem:[%s1670_s2 + $0x6d0] sm:$0xff] }
  0x31   :  { %458 = vmatprep.subr.mxu1 %v142_v36  ;;  %388 = vmatpush2.msra.mxu0 %v77_v39  ;;  %v182_v34 = vld [vmem:[%s1670_s2 + $0x4c8] sm:$0xff]  ;;  %v181_v36 = vld [vmem:[%s1670_s2 + $0x4c0] sm:$0xff]  ;;  %v180_v38 = vld [vmem:[%s1670_s2 + $0x4b8] sm:$0xff] }
  0x32   :  { %459 = vmatpush2.msra.mxu1 %v141_v40  ;;  %389 = vmatprep.subr.mxu0 %v76_v41  ;;  %v246_v35 = vld [vmem:[%s1670_s2 + $0x6c8] sm:$0xff]  ;;  %v245_v37 = vld [vmem:[%s1670_s2 + $0x6c0] sm:$0xff]  ;;  %v244_v39 = vld [vmem:[%s1670_s2 + $0x6b8] sm:$0xff] }
  0x33   :  { %460 = vmatprep.subr.mxu1 %v140_v42  ;;  %390 = vmatpush2.msra.mxu0 %v75_v43  ;;  %v179_v40 = vld [vmem:[%s1670_s2 + $0x4b0] sm:$0xff]  ;;  %v178_v42 = vld [vmem:[%s1670_s2 + $0x4a8] sm:$0xff]  ;;  %v241_v46 = vld [vmem:[%s1670_s2 + $0x6a0] sm:$0xff] }
  0x34   :  { %461 = vmatpush2.msra.mxu1 %v139_v45  ;;  %391 = vmatprep.subr.mxu0 %v74_v49  ;;  %v243_v41 = vld [vmem:[%s1670_s2 + $0x6b0] sm:$0xff]  ;;  %v242_v43 = vld [vmem:[%s1670_s2 + $0x6a8] sm:$0xff]  ;;  %v177_v45 = vld [vmem:[%s1670_s2 + $0x4a0] sm:$0xff] }
  0x35   :  { %462 = vmatprep.subr.mxu1 %v138_v50  ;;  %392 = vmatpush2.msra.mxu0 %v73_v51  ;;  %v176_v47 = vld [vmem:[%s1670_s2 + $0x498] sm:$0xff]  ;;  %v175_v49 = vld [vmem:[%s1670_s2 + $0x490] sm:$0xff]  ;;  %v174_v51 = vld [vmem:[%s1670_s2 + $0x488] sm:$0xff] }
  0x36   :  { %463 = vmatpush2.msra.mxu1 %v137_v52  ;;  %393 = vmatprep.subr.mxu0 %v72_v54  ;;  %v240_v48 = vld [vmem:[%s1670_s2 + $0x698] sm:$0xff]  ;;  %v239_v50 = vld [vmem:[%s1670_s2 + $0x690] sm:$0xff]  ;;  %v238_v52 = vld [vmem:[%s1670_s2 + $0x688] sm:$0xff] }
  0x37   :  { %464 = vmatprep.subr.mxu1 %v136_v55  ;;  %394 = vmatpush2.msra.mxu0 %v71_v57  ;;  %v173_v54 = vld [vmem:[%s1670_s2 + $0x480] sm:$0xff]  ;;  %v172_v56 = vld [vmem:[%s1670_s2 + $0x478] sm:$0xff] }
  0x38   :  { %465 = vmatpush2.msra.mxu1 %v135_v58  ;;  %395 = vmatprep.subr.mxu0 %v70_v59  ;;  %v237_v55 = vld [vmem:[%s1670_s2 + $0x680] sm:$0xff]  ;;  %v236_v57 = vld [vmem:[%s1670_s2 + $0x678] sm:$0xff]  ;;  %v171_v58 = vld [vmem:[%s1670_s2 + $0x470] sm:$0xff] }
  0x39   :  { %466 = vmatprep.subr.mxu1 %v134_v60  ;;  %396 = vmatpush2.msra.mxu0 %v69_v61  ;;  %v235_v59 = vld [vmem:[%s1670_s2 + $0x670] sm:$0xff]  ;;  %v170_v60 = vld [vmem:[%s1670_s2 + $0x468] sm:$0xff]  ;;  %v232_v1 = vld [vmem:[%s1670_s2 + $0x658] sm:$0xff] }
  0x3a   :  { %467 = vmatpush2.msra.mxu1 %v133_v62  ;;  %397 = vmatprep.subr.mxu0 %v68_v63  ;;  %v234_v61 = vld [vmem:[%s1670_s2 + $0x668] sm:$0xff]  ;;  %v169_v62 = vld [vmem:[%s1670_s2 + $0x460] sm:$0xff] }
  0x3b   :  { %468 = vmatprep.subr.mxu1 %v132_v0  ;;  %398 = vmatpush2.msra.mxu0 %v67_v2  ;;  %v233_v63 = vld [vmem:[%s1670_s2 + $0x660] sm:$0xff]  ;;  %v168_v0 = vld [vmem:[%s1670_s2 + $0x458] sm:$0xff]  ;;  %v167_v2 = vld [vmem:[%s1670_s2 + $0x450] sm:$0xff] }
  0x3c   :  { %469 = vmatpush2.msra.mxu1 %v131_v3  ;;  %399 = vmatprep.subr.mxu0 %v66_v4  ;;  %v231_v3 = vld [vmem:[%s1670_s2 + $0x650] sm:$0xff]  ;;  %v166_v4 = vld [vmem:[%s1670_s2 + $0x448] sm:$0xff] }
  0x3d   :  { %470 = vmatprep.subr.mxu1 %v130_v5  ;;  %400 = vmatpush2.msra.mxu0 %v65_v7  ;;  %v230_v5 = vld [vmem:[%s1670_s2 + $0x648] sm:$0xff]  ;;  %v229_v7 = vld [vmem:[%s1670_s2 + $0x640] sm:$0xff] }
  0x3e   :  { %471 = vmatpush2.msra.mxu1 %v129_v8  ;;  %401 = vmatprep.subr.mxu0 %v64_v9  ;;  %v164_v8 = vld [vmem:[%s1670_s2 + $0x438] sm:$0xff] }
  0x3f   :  { %472 = vmatprep.subr.mxu1 %v128_v10  ;;  %402 = vmatpush2.msra.mxu0 %v63_v12  ;;  %v228_v9 = vld [vmem:[%s1670_s2 + $0x638] sm:$0xff]  ;;  %v163_v10 = vld [vmem:[%s1670_s2 + $0x430] sm:$0xff]  ;;  %v162_v12 = vld [vmem:[%s1670_s2 + $0x428] sm:$0xff] }
  0x40   :  { %473 = vmatpush2.msra.mxu1 %v127_v13  ;;  %403 = vmatprep.subr.mxu0 %v62_v15  ;;  %v226_v13 = vld [vmem:[%s1670_s2 + $0x628] sm:$0xff]  ;;  %v161_v15 = vld [vmem:[%s1670_s2 + $0x420] sm:$0xff] }
  0x41   :  { %474 = vmatprep.subr.mxu1 %v126_v16  ;;  %404 = vmatpush2.msra.mxu0 %v61_v18  ;;  %v225_v16 = vld [vmem:[%s1670_s2 + $0x620] sm:$0xff]  ;;  %v224_v18 = vld [vmem:[%s1670_s2 + $0x618] sm:$0xff] }
  0x42   :  { %405 = vmatprep.mubr.f32.mxu0 %v314_v17  ;;  %475 = vmatpush2.msra.mxu1 %v125_v19  ;;  %v160_v17 = vld [vmem:[%s1670_s2 + $0x418] sm:$0xff]  ;;  %v159_v19 = vld [vmem:[%s1670_s2 + $0x410] sm:$0xff] }
  0x43   :  { %406 = vmatmul.mubr.f32.vlgmr.msra.gmra.mxu0 %v306_v6  ;;  %476 = vmatprep.mubr.f32.mxu1 %v315_v20  ;;  %v165_v6 = vld [vmem:[%s1670_s2 + $0x440] sm:$0xff]  ;;  %v223_v20 = vld [vmem:[%s1670_s2 + $0x610] sm:$0xff] }
  0x44   :  { %483 = vmatprep.subr.mxu0 %v188_v21  ;;  %554 = vmatprep.subr.mxu1 %v252_v22  ;;  %v158_v21 = vld [vmem:[%s1670_s2 + $0x408] sm:$0xff] }
  0x45   :  { %477 = vmatmul.mubr.f32.vlgmr.msra.gmra.mxu1 %v313_v11  ;;  %484 = vmatpush1.msra.mxu0 %v187_v23  ;;  %v227_v11 = vld [vmem:[%s1670_s2 + $0x630] sm:$0xff]  ;;  %v222_v22 = vld [vmem:[%s1670_s2 + $0x608] sm:$0xff]  ;;  %v157_v23 = vld [vmem:[%s1670_s2 + $0x400] sm:$0xff] }
  0x46   :  { %555 = vmatpush1.msra.mxu1 %v251_v24  ;;  %485 = vmatprep.subr.mxu0 %v186_v26  ;;  %v221_v24 = vld [vmem:[%s1670_s2 + $0x600] sm:$0xff]  ;;  %v220_v26 = vld [vmem:[%s1670_s2 + $0x5f8] sm:$0xff] }
  0x47   :  { %556 = vmatprep.subr.mxu1 %v250_v27  ;;  %486 = vmatpush1.msra.mxu0 %v185_v28  ;;  %v284_v27 = vld [vmem:[%s1670_s2 + $0x7f8] sm:$0xff]  ;;  %v219_v28 = vld [vmem:[%s1670_s2 + $0x5f0] sm:$0xff] }
  0x48   :  { %557 = vmatpush1.msra.mxu1 %v249_v29  ;;  %487 = vmatprep.subr.mxu0 %v184_v30  ;;  %v283_v29 = vld [vmem:[%s1670_s2 + $0x7f0] sm:$0xff]  ;;  %v218_v30 = vld [vmem:[%s1670_s2 + $0x5e8] sm:$0xff] }
  0x49   :  { %558 = vmatprep.subr.mxu1 %v248_v31  ;;  %488 = vmatpush1.msra.mxu0 %v183_v32  ;;  %v282_v31 = vld [vmem:[%s1670_s2 + $0x7e8] sm:$0xff]  ;;  %v217_v32 = vld [vmem:[%s1670_s2 + $0x5e0] sm:$0xff] }
  0x4a   :  { %559 = vmatpush1.msra.mxu1 %v247_v33  ;;  %489 = vmatprep.subr.mxu0 %v182_v34  ;;  %v281_v33 = vld [vmem:[%s1670_s2 + $0x7e0] sm:$0xff]  ;;  %v216_v34 = vld [vmem:[%s1670_s2 + $0x5d8] sm:$0xff] }
  0x4b   :  { %560 = vmatprep.subr.mxu1 %v246_v35  ;;  %490 = vmatpush1.msra.mxu0 %v181_v36  ;;  %v280_v35 = vld [vmem:[%s1670_s2 + $0x7d8] sm:$0xff]  ;;  %v215_v36 = vld [vmem:[%s1670_s2 + $0x5d0] sm:$0xff] }
  0x4c   :  { %561 = vmatpush1.msra.mxu1 %v245_v37  ;;  %491 = vmatprep.subr.mxu0 %v180_v38  ;;  %v279_v37 = vld [vmem:[%s1670_s2 + $0x7d0] sm:$0xff]  ;;  %v214_v38 = vld [vmem:[%s1670_s2 + $0x5c8] sm:$0xff] }
  0x4d   :  { %562 = vmatprep.subr.mxu1 %v244_v39  ;;  %492 = vmatpush1.msra.mxu0 %v179_v40  ;;  %v278_v39 = vld [vmem:[%s1670_s2 + $0x7c8] sm:$0xff]  ;;  %v213_v40 = vld [vmem:[%s1670_s2 + $0x5c0] sm:$0xff] }
  0x4e   :  { %563 = vmatpush1.msra.mxu1 %v243_v41  ;;  %493 = vmatprep.subr.mxu0 %v178_v42  ;;  %v277_v41 = vld [vmem:[%s1670_s2 + $0x7c0] sm:$0xff]  ;;  %v212_v42 = vld [vmem:[%s1670_s2 + $0x5b8] sm:$0xff] }
  0x4f   :  { %564 = vmatprep.subr.mxu1 %v242_v43  ;;  %494 = vmatpush1.msra.mxu0 %v177_v45  ;;  %v276_v43 = vld [vmem:[%s1670_s2 + $0x7b8] sm:$0xff]  ;;  %v211_v45 = vld [vmem:[%s1670_s2 + $0x5b0] sm:$0xff] }
  0x50   :  { %565 = vmatpush1.msra.mxu1 %v241_v46  ;;  %495 = vmatprep.subr.mxu0 %v176_v47  ;;  %v275_v46 = vld [vmem:[%s1670_s2 + $0x7b0] sm:$0xff]  ;;  %v210_v47 = vld [vmem:[%s1670_s2 + $0x5a8] sm:$0xff] }
  0x51   :  { %566 = vmatprep.subr.mxu1 %v240_v48  ;;  %496 = vmatpush1.msra.mxu0 %v175_v49  ;;  %v274_v48 = vld [vmem:[%s1670_s2 + $0x7a8] sm:$0xff]  ;;  %v209_v49 = vld [vmem:[%s1670_s2 + $0x5a0] sm:$0xff] }
  0x52   :  { %567 = vmatpush1.msra.mxu1 %v239_v50  ;;  %497 = vmatprep.subr.mxu0 %v174_v51  ;;  %v273_v50 = vld [vmem:[%s1670_s2 + $0x7a0] sm:$0xff]  ;;  %v208_v51 = vld [vmem:[%s1670_s2 + $0x598] sm:$0xff] }
  0x53   :  { %568 = vmatprep.subr.mxu1 %v238_v52  ;;  %498 = vmatpush1.msra.mxu0 %v173_v54  ;;  %v272_v52 = vld [vmem:[%s1670_s2 + $0x798] sm:$0xff]  ;;  %v207_v54 = vld [vmem:[%s1670_s2 + $0x590] sm:$0xff] }
  0x54   :  { %569 = vmatpush1.msra.mxu1 %v237_v55  ;;  %499 = vmatprep.subr.mxu0 %v172_v56  ;;  %v271_v55 = vld [vmem:[%s1670_s2 + $0x790] sm:$0xff]  ;;  %v206_v56 = vld [vmem:[%s1670_s2 + $0x588] sm:$0xff] }
  0x55   :  { %570 = vmatprep.subr.mxu1 %v236_v57  ;;  %500 = vmatpush1.msra.mxu0 %v171_v58  ;;  %v270_v57 = vld [vmem:[%s1670_s2 + $0x788] sm:$0xff]  ;;  %v205_v58 = vld [vmem:[%s1670_s2 + $0x580] sm:$0xff] }
  0x56   :  { %571 = vmatpush1.msra.mxu1 %v235_v59  ;;  %501 = vmatprep.subr.mxu0 %v170_v60  ;;  %v269_v59 = vld [vmem:[%s1670_s2 + $0x780] sm:$0xff]  ;;  %v204_v60 = vld [vmem:[%s1670_s2 + $0x578] sm:$0xff] }
  0x57   :  { %572 = vmatprep.subr.mxu1 %v234_v61  ;;  %502 = vmatpush1.msra.mxu0 %v169_v62  ;;  %v268_v61 = vld [vmem:[%s1670_s2 + $0x778] sm:$0xff]  ;;  %v203_v62 = vld [vmem:[%s1670_s2 + $0x570] sm:$0xff] }
  0x58   :  { %573 = vmatpush1.msra.mxu1 %v233_v63  ;;  %503 = vmatprep.subr.mxu0 %v168_v0  ;;  %v267_v63 = vld [vmem:[%s1670_s2 + $0x770] sm:$0xff]  ;;  %v202_v0 = vld [vmem:[%s1670_s2 + $0x568] sm:$0xff] }
  0x59   :  { %574 = vmatprep.subr.mxu1 %v232_v1  ;;  %504 = vmatpush1.msra.mxu0 %v167_v2  ;;  %v266_v1 = vld [vmem:[%s1670_s2 + $0x768] sm:$0xff]  ;;  %v201_v2 = vld [vmem:[%s1670_s2 + $0x560] sm:$0xff] }
  0x5a   :  { %575 = vmatpush1.msra.mxu1 %v231_v3  ;;  %505 = vmatprep.subr.mxu0 %v166_v4  ;;  %v265_v3 = vld [vmem:[%s1670_s2 + $0x760] sm:$0xff]  ;;  %v200_v4 = vld [vmem:[%s1670_s2 + $0x558] sm:$0xff] }
  0x5b   :  { %576 = vmatprep.subr.mxu1 %v230_v5  ;;  %506 = vmatpush1.msra.mxu0 %v165_v6  ;;  %v264_v5 = vld [vmem:[%s1670_s2 + $0x758] sm:$0xff]  ;;  %v199_v6 = vld [vmem:[%s1670_s2 + $0x550] sm:$0xff] }
  0x5c   :  { %577 = vmatpush1.msra.mxu1 %v229_v7  ;;  %507 = vmatprep.subr.mxu0 %v164_v8  ;;  %v263_v7 = vld [vmem:[%s1670_s2 + $0x750] sm:$0xff]  ;;  %v198_v8 = vld [vmem:[%s1670_s2 + $0x548] sm:$0xff] }
  0x5d   :  { %578 = vmatprep.subr.mxu1 %v228_v9  ;;  %508 = vmatpush1.msra.mxu0 %v163_v10  ;;  %v262_v9 = vld [vmem:[%s1670_s2 + $0x748] sm:$0xff]  ;;  %v197_v10 = vld [vmem:[%s1670_s2 + $0x540] sm:$0xff] }
  0x5e   :  { %579 = vmatpush1.msra.mxu1 %v227_v11  ;;  %509 = vmatprep.subr.mxu0 %v162_v12  ;;  %v261_v11 = vld [vmem:[%s1670_s2 + $0x740] sm:$0xff]  ;;  %v196_v12 = vld [vmem:[%s1670_s2 + $0x538] sm:$0xff] }
  0x5f   :  { %580 = vmatprep.subr.mxu1 %v226_v13  ;;  %510 = vmatpush1.msra.mxu0 %v161_v15  ;;  %v260_v13 = vld [vmem:[%s1670_s2 + $0x738] sm:$0xff]  ;;  %v195_v15 = vld [vmem:[%s1670_s2 + $0x530] sm:$0xff] }
  0x60   :  { %581 = vmatpush1.msra.mxu1 %v225_v16  ;;  %511 = vmatprep.subr.mxu0 %v160_v17  ;;  %v259_v16 = vld [vmem:[%s1670_s2 + $0x730] sm:$0xff]  ;;  %v194_v17 = vld [vmem:[%s1670_s2 + $0x528] sm:$0xff] }
  0x61   :  { %582 = vmatprep.subr.mxu1 %v224_v18  ;;  %512 = vmatpush1.msra.mxu0 %v159_v19  ;;  %v258_v18 = vld [vmem:[%s1670_s2 + $0x728] sm:$0xff]  ;;  %v193_v19 = vld [vmem:[%s1670_s2 + $0x520] sm:$0xff] }
  0x62   :  { %583 = vmatpush1.msra.mxu1 %v223_v20  ;;  %513 = vmatprep.subr.mxu0 %v158_v21  ;;  %v257_v20 = vld [vmem:[%s1670_s2 + $0x720] sm:$0xff]  ;;  %v192_v21 = vld [vmem:[%s1670_s2 + $0x518] sm:$0xff] }
  0x63   :  { %584 = vmatprep.subr.mxu1 %v222_v22  ;;  %514 = vmatpush1.msra.mxu0 %v157_v23  ;;  %v256_v22 = vld [vmem:[%s1670_s2 + $0x718] sm:$0xff]  ;;  %v191_v23 = vld [vmem:[%s1670_s2 + $0x510] sm:$0xff] }
  0x64   :  { %585 = vmatpush1.msra.mxu1 %v221_v24  ;;  %515 = vmatprep.subr.mxu0 %v220_v26  ;;  %v255_v24 = vld [vmem:[%s1670_s2 + $0x710] sm:$0xff]  ;;  %v190_v26 = vld [vmem:[%s1670_s2 + $0x508] sm:$0xff] }
  0x65   :  { %586 = vmatprep.subr.mxu1 %v284_v27  ;;  %516 = vmatpush2.msra.mxu0 %v219_v28  ;;  %v254_v27 = vld [vmem:[%s1670_s2 + $0x708] sm:$0xff]  ;;  %v331_v28 = vcombine.high %v1108_v44, %v1108_v44 }
  0x66   :  { %587 = vmatpush2.msra.mxu1 %v283_v29  ;;  %517 = vmatprep.subr.mxu0 %v218_v30  ;;  %v189_v29 = vld [vmem:[%s1670_s2 + $0x500] sm:$0xff]  ;;  %v332_v30 = vcombine.high %v1132_v53, %v1132_v53 }
  0x67   :  { %588 = vmatprep.subr.mxu1 %v282_v31  ;;  %518 = vmatpush2.msra.mxu0 %v217_v32  ;;  %v253_v31 = vld [vmem:[%s1670_s2 + $0x700] sm:$0xff]  ;;  %v762_v32 = vmov 0.0  }
  0x68   :  { %589 = vmatpush2.msra.mxu1 %v281_v33  ;;  %519 = vmatprep.subr.mxu0 %v216_v34  ;;  %v642_v33 = vld [vmem:[%s1673_s4 + $0x78] sm:$0xff]  ;;  %v641_v34 = vld [vmem:[%s1673_s4 + $0x70] sm:$0xff] }
  0x69   :  { %590 = vmatprep.subr.mxu1 %v280_v35  ;;  %520 = vmatpush2.msra.mxu0 %v215_v36  ;;  %v640_v35 = vld [vmem:[%s1673_s4 + $0x68] sm:$0xff]  ;;  %v637_v36 = vld [vmem:[%s1673_s4 + $0x50] sm:$0xff] }
  0x6a   :  { %591 = vmatpush2.msra.mxu1 %v279_v37  ;;  %521 = vmatprep.subr.mxu0 %v214_v38  ;;  %v636_v37 = vld [vmem:[%s1673_s4 + $0x48] sm:$0xff]  ;;  %v635_v38 = vld [vmem:[%s1673_s4 + $0x40] sm:$0xff] }
  0x6b   :  { %592 = vmatprep.subr.mxu1 %v278_v39  ;;  %522 = vmatpush2.msra.mxu0 %v213_v40  ;;  %v634_v39 = vld [vmem:[%s1673_s4 + $0x38] sm:$0xff]  ;;  %v633_v40 = vld [vmem:[%s1673_s4 + $0x30] sm:$0xff] }
  0x6c   :  { %593 = vmatpush2.msra.mxu1 %v277_v41  ;;  %523 = vmatprep.subr.mxu0 %v212_v42  ;;  %v632_v41 = vld [vmem:[%s1673_s4 + $0x28] sm:$0xff]  ;;  %v631_v42 = vld [vmem:[%s1673_s4 + $0x20] sm:$0xff] }
  0x6d   :  { %594 = vmatprep.subr.mxu1 %v276_v43  ;;  %524 = vmatpush2.msra.mxu0 %v211_v45  ;;  %v630_v43 = vld [vmem:[%s1673_s4 + $0x18] sm:$0xff]  ;;  %v629_v45 = vld [vmem:[%s1673_s4 + $0x10] sm:$0xff] }
  0x6e   :  { %595 = vmatpush2.msra.mxu1 %v275_v46  ;;  %525 = vmatprep.subr.mxu0 %v210_v47  ;;  %v628_v46 = vld [vmem:[%s1673_s4 + $0x8] sm:$0xff]  ;;  %v627_v47 = vld [vmem:[%s1673_s4] sm:$0xff] }
  0x6f   :  { %596 = vmatprep.subr.mxu1 %v274_v48  ;;  %526 = vmatpush2.msra.mxu0 %v209_v49  ;;  %v646_v48 = vld [vmem:[%s1673_s4 + $0x98] sm:$0xff]  ;;  %v645_v49 = vld [vmem:[%s1673_s4 + $0x90] sm:$0xff] }
  0x70   :  { %597 = vmatpush2.msra.mxu1 %v273_v50  ;;  %527 = vmatprep.subr.mxu0 %v208_v51  ;;  %v644_v50 = vld [vmem:[%s1673_s4 + $0x88] sm:$0xff]  ;;  %v643_v51 = vld [vmem:[%s1673_s4 + $0x80] sm:$0xff] }
  0x71   :  { %598 = vmatprep.subr.mxu1 %v272_v52  ;;  %528 = vmatpush2.msra.mxu0 %v207_v54  ;;  %v289_v52 = vsub.s32 0, %v1057_v25  ;;  %v285_v54 = vld [vmem:[%s1674_s3] sm:$0x3] }
  0x72   :  { %599 = vmatpush2.msra.mxu1 %v271_v55  ;;  %529 = vmatprep.subr.mxu0 %v206_v56  ;;  %v293_v55 = vsub.s32 1, %v1057_v25 }
  0x73   :  { %600 = vmatprep.subr.mxu1 %v270_v57  ;;  %530 = vmatpush2.msra.mxu0 %v205_v58  ;;  %v290_v57 = vrot.slane %v285_v54, %v289_v52 }
  0x74   :  { %601 = vmatpush2.msra.mxu1 %v269_v59  ;;  %531 = vmatprep.subr.mxu0 %v204_v60  ;;  %v294_v58 = vrot.slane %v285_v54, %v293_v55 }
  0x75   :  { %602 = vmatprep.subr.mxu1 %v268_v61  ;;  %532 = vmatpush2.msra.mxu0 %v203_v62 }
  0x76   :  { %603 = vmatpush2.msra.mxu1 %v267_v63  ;;  %533 = vmatprep.subr.mxu0 %v202_v0 }
  0x77   :  { %604 = vmatprep.subr.mxu1 %v266_v1  ;;  %534 = vmatpush2.msra.mxu0 %v201_v2 }
  0x78   :  { %605 = vmatpush2.msra.mxu1 %v265_v3  ;;  %535 = vmatprep.subr.mxu0 %v200_v4 }
  0x79   :  { %606 = vmatprep.subr.mxu1 %v264_v5  ;;  %536 = vmatpush2.msra.mxu0 %v199_v6 }
  0x7a   :  { %607 = vmatpush2.msra.mxu1 %v263_v7  ;;  %537 = vmatprep.subr.mxu0 %v198_v8 }
  0x7b   :  { %608 = vmatprep.subr.mxu1 %v262_v9  ;;  %538 = vmatpush2.msra.mxu0 %v197_v10 }
  0x7c   :  { %609 = vmatpush2.msra.mxu1 %v261_v11  ;;  %539 = vmatprep.subr.mxu0 %v196_v12  ;;  %v757_v11 = vld [vmem:[%s1675_s5] ss:$0 sm:$0xff] }
  0x7d   :  { %610 = vmatprep.subr.mxu1 %v260_v13  ;;  %540 = vmatpush2.msra.mxu0 %v195_v15 }
  0x7e   :  { %611 = vmatpush2.msra.mxu1 %v259_v16  ;;  %541 = vmatprep.subr.mxu0 %v194_v17  ;;  %v729_v17 = vand.u32 127, %v287_v14 }
  0x7f   :  { %612 = vmatprep.subr.mxu1 %v258_v18  ;;  %542 = vmatpush2.msra.mxu0 %v193_v19 }
  0x80   :  { %613 = vmatpush2.msra.mxu1 %v257_v20  ;;  %543 = vmatprep.subr.mxu0 %v192_v21 }
  0x81   :  { %614 = vmatprep.subr.mxu1 %v256_v22  ;;  %544 = vmatpush2.msra.mxu0 %v191_v23 }
  0x82   :  { %615 = vmatpush2.msra.mxu1 %v255_v24  ;;  %545 = vmatprep.subr.mxu0 %v190_v26 }
  0x83   :  { %616 = vmatprep.subr.mxu1 %v254_v27  ;;  %546 = vmatpush2.msra.mxu0 %v189_v29 }
  0x84   :  { %547 = vmatprep.mubr.f32.mxu0 %v331_v28  ;;  %617 = vmatpush2.msra.mxu1 %v253_v31 }
  0x85   :  { %618 = vmatprep.mubr.f32.mxu1 %v332_v30  ;;  %548 = vmatmul.mubr.f32.vlgmr.msra.gmra.mxu0 %v1108_v44  ;;  %v639_v44 = vld [vmem:[%s1673_s4 + $0x60] sm:$0xff] }
  0x86   :  { %619 = vmatmul.mubr.f32.vlgmr.msra.gmra.mxu1 %v1132_v53  ;;  %658 = vmatprep.subr.mxu0 %v762_v32  ;;  %v638_v53 = vld [vmem:[%s1673_s4 + $0x58] sm:$0xff] }
  0x87   :  { %659 = vmatpush1.msra.mxu0 %v642_v33 }
  0x88   :  { %660 = vmatprep.subr.mxu0 %v762_v32 }
  0x89   :  { %661 = vmatpush1.msra.mxu0 %v641_v34 }
  0x8a   :  { %662 = vmatprep.subr.mxu0 %v762_v32 }
  0x8b   :  { %663 = vmatpush1.msra.mxu0 %v640_v35 }
  0x8c   :  { %664 = vmatprep.subr.mxu0 %v762_v32 }
  0x8d   :  { %665 = vmatpush1.msra.mxu0 %v639_v44 }
  0x8e   :  { %666 = vmatprep.subr.mxu0 %v762_v32 }
  0x8f   :  { %667 = vmatpush1.msra.mxu0 %v638_v53 }
  0x90   :  { %668 = vmatprep.subr.mxu0 %v762_v32 }
  0x91   :  { %669 = vmatpush1.msra.mxu0 %v637_v36 }
  0x92   :  { %670 = vmatprep.subr.mxu0 %v762_v32 }
  0x93   :  { %671 = vmatpush1.msra.mxu0 %v636_v37 }
  0x94   :  { %672 = vmatprep.subr.mxu0 %v762_v32 }
  0x95   :  { %673 = vmatpush1.msra.mxu0 %v635_v38 }
  0x96   :  { %674 = vmatprep.subr.mxu0 %v762_v32 }
  0x97   :  { %675 = vmatpush1.msra.mxu0 %v634_v39 }
  0x98   :  { %676 = vmatprep.subr.mxu0 %v762_v32 }
  0x99   :  { %677 = vmatpush1.msra.mxu0 %v633_v40 }
  0x9a   :  { %678 = vmatprep.subr.mxu0 %v762_v32 }
  0x9b   :  { %679 = vmatpush1.msra.mxu0 %v632_v41 }
  0x9c   :  { %680 = vmatprep.subr.mxu0 %v762_v32 }
  0x9d   :  { %681 = vmatpush1.msra.mxu0 %v631_v42 }
  0x9e   :  { %682 = vmatprep.subr.mxu0 %v762_v32 }
  0x9f   :  { %683 = vmatpush1.msra.mxu0 %v630_v43 }
  0xa0   :  { %684 = vmatprep.subr.mxu0 %v762_v32 }
  0xa1   :  { %685 = vmatpush1.msra.mxu0 %v629_v45 }
  0xa2   :  { %686 = vmatprep.subr.mxu0 %v762_v32 }
  0xa3   :  { %687 = vmatpush1.msra.mxu0 %v628_v46 }
  0xa4   :  { %688 = vmatprep.subr.mxu0 %v762_v32 }
  0xa5   :  { %689 = vmatpush1.msra.mxu0 %v627_v47 }
  0xa6   :  { %714 = vmatprep.subr.mxu0 %v762_v32 }
  0xa7   :  { %715 = vmatpush2.msra.mxu0 %v646_v48 }
  0xa8   :  { %716 = vmatprep.subr.mxu0 %v762_v32 }
  0xa9   :  { %717 = vmatpush2.msra.mxu0 %v645_v49 }
  0xaa   :  { %718 = vmatprep.subr.mxu0 %v762_v32 }
  0xab   :  { %719 = vmatpush2.msra.mxu0 %v644_v50 }
  0xac   :  { %720 = vmatprep.subr.mxu0 %v762_v32 }
  0xad   :  { %721 = vmatpush2.msra.mxu0 %v643_v51 }
 0x103   :  { %v407_v56 = vpop.f32.mrf.mxu0 }
 0x104   :  { %v408_v61 = vadd.f32 %v407_v56, %v290_v57 }
 0x105   :  { %v478_v59 = vpop.f32.mrf.mxu1  ;;  %v409_v60 = vpop.f32.mrf.mxu0 }
 0x106   :  { %v410_v62 = vadd.f32 %v409_v60, %v294_v58  ;;  %v479_v0 = vadd.f32 %v478_v59, %v408_v61 }
 0x107   :  { %v480_v63 = vpop.f32.mrf.mxu1 }
 0x108   :  { %v481_v3 = vadd.f32 %v480_v63, %v410_v62 }
 0x145   :  { %v549_v1 = vpop.f32.mrf.mxu0 }
 0x146   :  { %v620_v2 = vpop.f32.mrf.mxu1  ;;  %v550_v4 = vadd.f32 %v549_v1, %v479_v0 }
 0x147   :  { %v551_v5 = vpop.f32.mrf.mxu0 }
 0x148   :  { %v552_v6 = vadd.f32 %v551_v5, %v481_v3  ;;  %v621_v7 = vadd.f32 %v620_v2, %v550_v4  ;;  %v622_v8 = vpop.f32.mrf.mxu1 }
 0x14a   :  { %v623_v9 = vadd.f32 %v622_v8, %v552_v6  ;;  %v625_v10 = vmax.f32 %v621_v7, 0.0 }
 0x14c   :  { %v626_v25 = vmax.f32 %v623_v9, 0.0 }
 0x14e   :  { %758 = vmatprep.mubr.msk.f32.mxu0 %vm654_vm0, %v626_v25 }
 0x14f   :  { %723 = vmatmul.mubr.f32.vlgmr.msra.gmra.mxu0 %v625_v10 }
 0x20f   :  { %v724_v12 = vpop.f32.mrf.mxu0 }
 0x210   :  { %v725_v13 = vadd.f32 %v757_v11, %v724_v12 }
 0x211   :  { %v726_v15 = vpop.f32.mrf.mxu0 }
 0x212   :  { %v731_v16 = vsel %vm730_vm1, %v725_v13, -inf }
 0x213   :  { %732 = vmax.xlane.f32.xlu0 %v731_v16 }
 0x29c   :  { %v733_v18 = vpop.xlane.xlu0 %732 }
 0x29d   :  { %vm734_vm2 = vcmp.eq.f32.partialorder %v725_v13, %v733_v18 }
 0x29e   :  { %v735_v19 = vsel %vm734_vm2, %v729_v17, 5 }
 0x29f   :  { %v736_v20 = vsel %vm730_vm1, %v735_v19, 2147483647 }
 0x2a0   :  { %v738_v21 = vshra.s32 %v736_v20, 16  ;;  %v737_v23 = vand.u32 65535, %v736_v20 }
 0x2a2   :  { %v740_v22 = vcvt.s32.f32 %v738_v21  ;;  %v739_v26 = vcvt.s32.f32 %v737_v23 }
 0x2a4   :  { %741 = vmin.xlane.f32.xlu0 %v740_v22 }
 0x32d   :  { %v742_v24 = vpop.xlane.xlu0 %741 }
 0x32e   :  { %vm743_vm3 = vcmp.eq.f32.partialorder %v740_v22, %v742_v24  ;;  %v748_v28 = vcvt.f32.s32 %v742_v24 }
 0x32f   :  { %v744_v27 = vsel %vm743_vm3, %v739_v26, inf }
 0x330   :  { %745 = vmin.xlane.f32.xlu1 %v744_v27  ;;  %v749_v30 = vshll.u32 %v748_v28, 16 }
 0x3b9   :  { %v746_v29 = vpop.xlane.xlu1 %745 }
 0x3ba   :  { %v747_v31 = vcvt.f32.s32 %v746_v29 }
 0x3bc   :  { %v750_v32 = vadd.s32 %v749_v30, %v747_v31 }
 0x3be   :  { %752 = vst.msk [vmem:[%s1676_s6] sm:$0x3] %vm751_vm4, %v750_v32 }

</bundles_post_ra>
